<compile_context>
chip_gen: v7x
topology: tpu7x:2x2x1
jax: 0.10.0
libtpu: 0.0.40
codegen_flags: <defaults>
</compile_context>

<pallas_src>
import numpy as np
import jax
import jax.numpy as jnp
from jax.experimental import pallas as pl
from jax.experimental.pallas import tpu as pltpu


def _round_up(n, m):
    return ((n + m - 1) // m) * m


def patchify(x_nchw, ph, pw):
    """NCHW -> (B, P, C*ph*pw) patch layout (row-major patch flatten)."""
    B, C, H, W = x_nchw.shape
    x = x_nchw.reshape(B, C, H // ph, ph, W // pw, pw)
    x = jnp.transpose(x, (0, 2, 4, 1, 3, 5))            # B, H/ph, W/pw, C, ph, pw
    return x.reshape(B, (H // ph) * (W // pw), C * ph * pw)


# ---------------------------------------------------------------------------
# Kernel: one batch tile per grid step.
#   pooled = sum_p(image patches)                       (f32, VPU/XLU)
#   feat   = pooled @ W_comb + prompt_bias              (MXU, f32 accumulate)
#   feat   = feat * rsqrt(sum feat^2 + eps)             (f32 normalize, EUP rsqrt)
#   out    = feat @ (logit_scale * text_features.T)     (MXU, f32 accumulate)
def vpt_clip_kernel(img_ref, wcomb_ref, bias_ref, text_ref, out_ref):
    pooled = jnp.sum(img_ref[...].astype(jnp.float32), axis=1)          # (TB, PD)
    feat = jnp.dot(pooled.astype(wcomb_ref.dtype), wcomb_ref[...],
                   preferred_element_type=jnp.float32)                   # (TB, Dp)
    feat = feat + bias_ref[...]                                          # prompt bias (1, Dp), f32
    inv_norm = jax.lax.rsqrt(
        jnp.sum(feat * feat, axis=-1, keepdims=True) + 1e-12)
    feat = feat * inv_norm
    out_ref[...] = jnp.dot(feat.astype(text_ref.dtype), text_ref[...],
                           preferred_element_type=jnp.float32)           # (TB, Kp)


def prepare_vpt_params(params, patch_hw, compute_dtype=jnp.bfloat16):
    """One-time host-side prefusion (hoisted out of the per-forward path)."""
    ph, pw = patch_hw
    prm = patchify(params["prompt_full"], ph, pw)                        # (1, P, PD), f32
    P = prm.shape[1]

    # TODO(synk): linearity folds below are only valid for the linear placeholder
    # encoder (not a real CLIP ViT).
    w_comb = (params["w_patch"] @ params["w_proj"]) / P                  # (PD, D)  f32
    bias = jnp.sum(prm, axis=1) @ w_comb                                 # (1, D)   f32
    text_scaled = params["logit_scale"][0] * params["text_features_T"]   # (D, K)   f32

    D = w_comb.shape[1]
    K = text_scaled.shape[1]
    Dp = _round_up(D, 128)
    Kp = _round_up(K, 128)

    # Lane-dense zero padding: full MXU columns + unmasked output stores.
    w_comb_p = jnp.zeros((w_comb.shape[0], Dp), jnp.float32).at[:, :D].set(
        w_comb).astype(compute_dtype)
    bias_p = jnp.zeros((1, Dp), jnp.float32).at[:, :D].set(bias)         # stays f32
    text_p = jnp.zeros((Dp, Kp), jnp.float32).at[:D, :K].set(
        text_scaled).astype(compute_dtype)

    return dict(w_comb_p=w_comb_p, bias_p=bias_p, text_p=text_p,
                P=P, D=D, K=K, Dp=Dp, Kp=Kp)


def visual_prompt_clip_forward(image_nchw, fused, patch_hw, *,
                               block_b=512, compute_dtype=jnp.bfloat16):
    """Full VisualPromptCLIP forward via a batch-tiled Pallas kernel."""
    ph, pw = patch_hw
    img = patchify(image_nchw, ph, pw).astype(compute_dtype)             # (B, P, PD) bf16
    B, P, PD = img.shape
    assert P == fused["P"]
    Dp, Kp, K = fused["Dp"], fused["Kp"], fused["K"]
    item = jnp.dtype(compute_dtype).itemsize

    # --- Batch tile: the biggest that fits (amortizes ~0.35us/step + fills MXU rows),
    # capped so double-buffered image blocks stay well within scoped VMEM (v7x: 64 MiB).
    tb_cap = max(8, ((12 << 20) // (2 * P * PD * item)) // 8 * 8)
    tb = max(8, min(_round_up(block_b, 8), _round_up(B, 8), tb_cap))

    # --- Ragged batch: pad to a multiple of tb (pl.cdiv grid), slice off afterwards.
    nb = pl.cdiv(B, tb)
    Bp = nb * tb
    if Bp != B:
        img = jnp.pad(img, ((0, Bp - B), (0, 0), (0, 0)))

    # VMEM budget: double-buffered image + output blocks, single-buffered weights/bias.
    vmem_bytes = (2 * tb * P * PD * item + 2 * tb * Kp * 4
                  + PD * Dp * item + Dp * Kp * item + Dp * 4)
    vmem_limit = int(min(max(2 * vmem_bytes, 32 << 20), 48 << 20))

    const = dict(pipeline_mode=pl.Buffered(buffer_count=1))   # fetched once, single buffer

    out = pl.pallas_call(
        vpt_clip_kernel,
        out_shape=jax.ShapeDtypeStruct((Bp, Kp), jnp.float32),
        grid_spec=pltpu.PrefetchScalarGridSpec(
            num_scalar_prefetch=0,
            grid=(nb,),
            in_specs=[
                pl.BlockSpec((tb, P, PD), lambda b: (b, 0, 0)),          # image: batch-tiled
                pl.BlockSpec((PD, Dp), lambda b: (0, 0), **const),       # fused encoder weight
                pl.BlockSpec((1, Dp), lambda b: (0, 0), **const),        # prompt bias (f32)
                pl.BlockSpec((Dp, Kp), lambda b: (0, 0), **const),       # scaled text features
            ],
            out_specs=pl.BlockSpec((tb, Kp), lambda b: (b, 0)),
        ),
        compiler_params=pltpu.CompilerParams(
            dimension_semantics=("parallel",),        # shard batch tiles across TCs (v7x)
            vmem_limit_bytes=vmem_limit),
    )(img, fused["w_comb_p"], fused["bias_p"], fused["text_p"])

    return out[:B, :K]


def reference_forward(image_nchw, params, patch_hw, compute_dtype=jnp.bfloat16):
    """Pure-JAX reference following the module's forward, mirroring the kernel's
    bf16 quantization points and the (linear-encoder-only) prompt / W_comb folds."""
    ph, pw = patch_hw
    img = patchify(image_nchw, ph, pw).astype(compute_dtype).astype(jnp.float32)
    prm = patchify(params["prompt_full"], ph, pw)                        # (1, P, PD) f32
    P = img.shape[1]
    w_comb = (params["w_patch"] @ params["w_proj"]) / P
    text_scaled = params["logit_scale"][0] * params["text_features_T"]

    pooled = jnp.sum(img, axis=1)
    bias = jnp.sum(prm, axis=1) @ w_comb
    feat = jnp.dot(pooled.astype(compute_dtype), w_comb.astype(compute_dtype),
                   preferred_element_type=jnp.float32) + bias
    feat = feat * jax.lax.rsqrt(jnp.sum(feat * feat, axis=-1, keepdims=True) + 1e-12)
    return jnp.dot(feat.astype(compute_dtype), text_scaled.astype(compute_dtype),
                   preferred_element_type=jnp.float32)


if __name__ == "__main__":
    # Small shapes consistent with the module's forward (B intentionally not a
    # multiple of the small tile to exercise the ragged-batch path).
    B, C, H, W = 20, 3, 32, 32          # image batch, NCHW
    PROMPT_SIZE = 4                     # FixedPatchPrompter patch size
    PH, PW = 8, 8                       # ViT patch size -> P = 16 patches, PD = 192
    HIDDEN, EMBED, NUM_CLASSES = 64, 32, 8

    key = jax.random.PRNGKey(0)
    k_img, k_prompt, k_wp, k_proj, k_txt = jax.random.split(key, 5)

    image = jax.random.normal(k_img, (B, C, H, W), dtype=jnp.float32)

    # FixedPatchPrompter parameter: (1, 3, psize, psize), placed top-left into a
    # zero full-image tensor (placement is parameter setup; the add is folded into
    # the kernel bias — see prepare_vpt_params).
    patch = jax.random.normal(k_prompt, (1, C, PROMPT_SIZE, PROMPT_SIZE), jnp.float32)
    prompt_full = jnp.zeros((1, C, H, W), jnp.float32)
    prompt_full = prompt_full.at[:, :, :PROMPT_SIZE, :PROMPT_SIZE].set(patch)

    # Synthetic (deterministic) CLIP image-encoder weights.
    PD = C * PH * PW
    w_patch = jax.random.normal(k_wp, (PD, HIDDEN), jnp.float32) / np.sqrt(PD)
    w_proj = jax.random.normal(k_proj, (HIDDEN, EMBED), jnp.float32) / np.sqrt(HIDDEN)

    # Precomputed, L2-normalized text features (as in __init__), stored transposed
    # (D, K) so the kernel computes feats @ text_features.T without a transpose.
    text_features = jax.random.normal(k_txt, (NUM_CLASSES, EMBED), jnp.float32)
    text_features = text_features / jnp.linalg.norm(text_features, axis=-1, keepdims=True)

    # logit_scale = exp(ln(1/0.07)) = 1/0.07, as in CLIP.
    logit_scale = jnp.full((1,), 1.0 / 0.07, dtype=jnp.float32)

    params = dict(prompt_full=prompt_full, w_patch=w_patch, w_proj=w_proj,
                  text_features_T=text_features.T, logit_scale=logit_scale)

    # One-time host-side prefusion (hoisted out of the per-forward path).
    fused = prepare_vpt_params(params, (PH, PW))

    ref = reference_forward(image, params, (PH, PW))
    ref_np = np.asarray(jax.block_until_ready(ref))

    # 1) Default large tile: single grid step here (B padded to one tile of 24).
    logits = visual_prompt_clip_forward(image, fused, (PH, PW))
    logits = jax.block_until_ready(logits)
    assert logits.shape == (B, NUM_CLASSES)
    err = np.max(np.abs(np.asarray(logits) - ref_np))
    assert np.allclose(np.asarray(logits), ref_np, atol=5e-2, rtol=2e-2), err

    # 2) Small tile: multi-step pipelined grid with a ragged (padded) final tile.
    logits_tiled = visual_prompt_clip_forward(image, fused, (PH, PW), block_b=8)
    logits_tiled = jax.block_until_ready(logits_tiled)
    err_t = np.max(np.abs(np.asarray(logits_tiled) - ref_np))
    assert np.allclose(np.asarray(logits_tiled), ref_np, atol=5e-2, rtol=2e-2), err_t

    print("KERNEL_OK")
</pallas_src>

<mosaic_0001>
module attributes {stable_mosaic.version = 11 : i64} {
  func.func @vpt_clip_kernel(%arg0: i32, %arg1: memref<24x16x192xbf16, #tpu.memory_space<vmem>>, %arg2: memref<192x128xbf16, #tpu.memory_space<vmem>>, %arg3: memref<1x128xf32, #tpu.memory_space<vmem>>, %arg4: memref<128x128xbf16, #tpu.memory_space<vmem>>, %arg5: memref<24x128xf32, #tpu.memory_space<vmem>>) attributes {dimension_semantics = [#tpu.dimension_semantics<parallel>], iteration_bounds = array<i64: 1>, scalar_prefetch = 0 : i64, scratch_operands = 0 : i64, tpu.core_type = #tpu.core_type<tc>, window_params = [{transform_indices = @transform_0, window_bounds = array<i64: 24, 16, 192>}, {pipeline_mode = #tpu.pipeline_mode<synchronous>, transform_indices = @transform_1, window_bounds = array<i64: 192, 128>}, {pipeline_mode = #tpu.pipeline_mode<synchronous>, transform_indices = @transform_2, window_bounds = array<i64: 1, 128>}, {pipeline_mode = #tpu.pipeline_mode<synchronous>, transform_indices = @transform_3, window_bounds = array<i64: 128, 128>}, {transform_indices = @transform_4, window_bounds = array<i64: 24, 128>}]} {
    %c0 = arith.constant 0 : index
    %c0_0 = arith.constant 0 : index
    %c0_1 = arith.constant 0 : index
    %0 = vector.load %arg1[%c0, %c0_0, %c0_1] : memref<24x16x192xbf16, #tpu.memory_space<vmem>>, vector<24x16x192xbf16>
    %1 = arith.extf %0 : vector<24x16x192xbf16> to vector<24x16x192xf32>
    %cst = arith.constant dense<0.000000e+00> : vector<24x192xf32>
    %2 = vector.multi_reduction <add>, %1, %cst [1] : vector<24x16x192xf32> to vector<24x192xf32>
    %3 = arith.truncf %2 : vector<24x192xf32> to vector<24x192xbf16>
    %c0_2 = arith.constant 0 : index
    %c0_3 = arith.constant 0 : index
    %4 = vector.load %arg2[%c0_2, %c0_3] : memref<192x128xbf16, #tpu.memory_space<vmem>>, vector<192x128xbf16>
    %cst_4 = arith.constant dense<0.000000e+00> : vector<24x128xf32>
    %5 = tpu.matmul %3, %4, %cst_4 {dimension_numbers = #tpu.dot_dimension_numbers<[1], [0], [0], [1], [0, 0, 1, 1], [], []>} : vector<24x192xbf16>, vector<192x128xbf16>, vector<24x128xf32> -> vector<24x128xf32>
    %c0_5 = arith.constant 0 : index
    %c0_6 = arith.constant 0 : index
    %6 = vector.load %arg3[%c0_5, %c0_6] : memref<1x128xf32, #tpu.memory_space<vmem>>, vector<1x128xf32>
    %7 = vector.broadcast %6 : vector<1x128xf32> to vector<24x128xf32>
    %8 = arith.addf %5, %7 : vector<24x128xf32>
    %9 = arith.mulf %8, %8 : vector<24x128xf32>
    %cst_7 = arith.constant dense<0.000000e+00> : vector<24xf32>
    %10 = vector.multi_reduction <add>, %9, %cst_7 [1] : vector<24x128xf32> to vector<24xf32>
    %11 = vector.shape_cast %10 : vector<24xf32> to vector<24x1xf32>
    %cst_8 = arith.constant 9.99999996E-13 : f32
    %12 = vector.broadcast %cst_8 : f32 to vector<24x1xf32>
    %13 = arith.addf %11, %12 : vector<24x1xf32>
    %14 = math.rsqrt %13 : vector<24x1xf32>
    %15 = vector.broadcast %14 : vector<24x1xf32> to vector<24x128xf32>
    %16 = arith.mulf %8, %15 : vector<24x128xf32>
    %17 = arith.truncf %16 : vector<24x128xf32> to vector<24x128xbf16>
    %c0_9 = arith.constant 0 : index
    %c0_10 = arith.constant 0 : index
    %18 = vector.load %arg4[%c0_9, %c0_10] : memref<128x128xbf16, #tpu.memory_space<vmem>>, vector<128x128xbf16>
    %cst_11 = arith.constant dense<0.000000e+00> : vector<24x128xf32>
    %19 = tpu.matmul %17, %18, %cst_11 {dimension_numbers = #tpu.dot_dimension_numbers<[1], [0], [0], [1], [0, 0, 1, 1], [], []>} : vector<24x128xbf16>, vector<128x128xbf16>, vector<24x128xf32> -> vector<24x128xf32>
    %c0_12 = arith.constant 0 : index
    %c0_13 = arith.constant 0 : index
    %20 = vector.load %arg5[%c0_12, %c0_13] : memref<24x128xf32, #tpu.memory_space<vmem>>, vector<24x128xf32>
    tpu.vector_store %arg5[%c0_12, %c0_13], %19 {strides = array<i32>} : memref<24x128xf32, #tpu.memory_space<vmem>>, vector<24x128xf32>,
    return
  }
  func.func @transform_0(%arg0: i32) -> (i32, i32, i32) {
    %c0_i32 = arith.constant 0 : i32
    %c0_i32_0 = arith.constant 0 : i32
    %c0_i32_1 = arith.constant 0 : i32
    return %arg0, %c0_i32, %c0_i32_0 : i32, i32, i32
  }
  func.func @transform_1(%arg0: i32) -> (i32, i32) {
    %c0_i32 = arith.constant 0 : i32
    %c0_i32_0 = arith.constant 0 : i32
    %c0_i32_1 = arith.constant 0 : i32
    return %c0_i32, %c0_i32_0 : i32, i32
  }
  func.func @transform_2(%arg0: i32) -> (i32, i32) {
    %c0_i32 = arith.constant 0 : i32
    %c0_i32_0 = arith.constant 0 : i32
    %c0_i32_1 = arith.constant 0 : i32
    return %c0_i32, %c0_i32_0 : i32, i32
  }
  func.func @transform_3(%arg0: i32) -> (i32, i32) {
    %c0_i32 = arith.constant 0 : i32
    %c0_i32_0 = arith.constant 0 : i32
    %c0_i32_1 = arith.constant 0 : i32
    return %c0_i32, %c0_i32_0 : i32, i32
  }
  func.func @transform_4(%arg0: i32) -> (i32, i32) {
    %c0_i32 = arith.constant 0 : i32
    %c0_i32_0 = arith.constant 0 : i32
    return %arg0, %c0_i32 : i32, i32
  }
}

</mosaic_0001>

<bundles_post_ra>
// kernel: tpu_custom_call.1
= control target key start
LH: loop header
LB: loop body
LE: loop exit
PB: predicated region body
PF: predicated region fallthrough
CT: control target
= control target key end

     0   :  { %9 = vsyncpa [#allocation3], 0  ;;  %s1833_s0 = inlined_call_operand.hbm [shape: bf16[24,16,192], index: 0, kind: input, shape index: {}]   ;;  %s1834_s1 = inlined_call_operand.hbm [shape: bf16[192,128], index: 1, kind: input, shape index: {}]   ;;  %s1835_s2 = inlined_call_operand.vmem [shape: f32[1,128], index: 2, kind: input, shape index: {}]   ;;  %s1836_s3 = inlined_call_operand.hbm [shape: bf16[128,128], index: 3, kind: input, shape index: {}]   ;;  %s1837_s4 = inlined_call_operand.hbm [shape: f32[24,128], index: 4, kind: output, shape index: {}]  }
   0x1   :  { %10 = vsyncpa [#allocation6], 0 }
   0x2   :  { %11 = vsyncpa [#allocation4], 0  ;;  %s1280_s15 = smov [#allocation5]   ;;  %s1186_s19 = scalar_lea.hbm %s1834_s1, 1536 }
   0x3   :  { %s29_s16 = sshll.u32 %s1280_s15, 4  ;;  %p1187_p0 = scmp.ne.s32.totalorder %s1834_s1, %s1186_s19  ;;  %s30_s16 = int_to_ptr.vmem [resolvable:$true] %s29_s16 }
   0x4   :  { %p1190_p1 = scmp.lt.u32.totalorder %s1186_s19, %s1834_s1 }
   0x6   :  { %p1192_p2 = pnand %p1190_p1, %p1187_p0 }
   0x8   :  { %1195 = shalt.err (!%p1192_p2)
}
   0x9   :  { %s1196_s24 = scalar_lea.vmem %s30_s16, 1536  ;;  %p1201_p4 = scmp.lt.s32.totalorder %s30_s16, %s30_s16 }
   0xa   :  { %p1197_p3 = scmp.ne.s32.totalorder %s30_s16, %s1196_s24  ;;  %p1202_p5 = scmp.lt.s32.totalorder %s1196_s24, %s1196_s24 }
   0xc   :  { %p1203_p6 = por %p1202_p5, %p1201_p4 }
   0xe   :  { %p1204_p7 = pnand %p1203_p6, %p1197_p3 }
  0x10   :  { %1207 = shalt.err (!%p1204_p7)
}
  0x11   :  { %s1281_s25 = smov 64   ;;  %s1282_s26 = smov 4  }
  0x12   :  { %35 = dma.hbm_to_vmem [thread:$0]  %s1834_s1, 1536, %s30_s16, [#allocation6], %s1281_s25, %s1281_s25, %s1282_s26  }
  0x13   :  { %s1283_s29 = smov [#allocation2]   ;;  %s1208_s7 = scalar_lea.hbm %s1833_s0, 6144 }
  0x14   :  { %s17_s30 = sshll.u32 %s1283_s29, 4  ;;  %p1209_p8 = scmp.ne.s32.totalorder %s1833_s0, %s1208_s7  ;;  %s18_s30 = int_to_ptr.vmem [resolvable:$true] %s17_s30 }
  0x15   :  { %p1212_p9 = scmp.lt.u32.totalorder %s1208_s7, %s1833_s0 }
  0x17   :  { %p1214_p10 = pnand %p1212_p9, %p1209_p8 }
  0x19   :  { %1217 = shalt.err (!%p1214_p10)
}
  0x1a   :  { %s1218_s12 = scalar_lea.vmem %s18_s30, 6144  ;;  %p1223_p12 = scmp.lt.s32.totalorder %s18_s30, %s18_s30 }
  0x1b   :  { %p1219_p11 = scmp.ne.s32.totalorder %s18_s30, %s1218_s12  ;;  %p1224_p13 = scmp.lt.s32.totalorder %s1218_s12, %s1218_s12 }
  0x1d   :  { %p1225_p0 = por %p1224_p13, %p1223_p12 }
  0x1f   :  { %p1226_p1 = pnand %p1225_p0, %p1219_p11 }
  0x21   :  { %1229 = shalt.err (!%p1226_p1)
}
  0x22   :  { %s1284_s1 = smov 128   ;;  %s1285_s13 = smov 8  }
  0x23   :  { %23 = dma.hbm_to_vmem [thread:$0]  %s1833_s0, 6144, %s18_s30, [#allocation3], %s1284_s1, %s1284_s1, %s1285_s13  }
  0x24   :  { %s1286_s16 = smov [#allocation7]   ;;  %s1230_s20 = scalar_lea.hbm %s1836_s3, 1024 }
  0x25   :  { %s43_s17 = sshll.u32 %s1286_s16, 4  ;;  %p1231_p2 = scmp.ne.s32.totalorder %s1836_s3, %s1230_s20  ;;  %s44_s17 = int_to_ptr.vmem [resolvable:$true] %s43_s17 }
  0x26   :  { %p1234_p3 = scmp.lt.u32.totalorder %s1230_s20, %s1836_s3 }
  0x28   :  { %p1236_p4 = pnand %p1234_p3, %p1231_p2 }
  0x2a   :  { %1239 = shalt.err (!%p1236_p4)
}
  0x2b   :  { %s1240_s27 = scalar_lea.vmem %s44_s17, 1024  ;;  %p1245_p6 = scmp.lt.s32.totalorder %s44_s17, %s44_s17 }
  0x2c   :  { %p1241_p5 = scmp.ne.s32.totalorder %s44_s17, %s1240_s27  ;;  %p1246_p7 = scmp.lt.s32.totalorder %s1240_s27, %s1240_s27 }
  0x2e   :  { %p1247_p8 = por %p1246_p7, %p1245_p6 }
  0x30   :  { %p1248_p9 = pnand %p1247_p8, %p1241_p5 }
  0x32   :  { %1251 = shalt.err (!%p1248_p9)
}
  0x33   :  { %49 = dma.hbm_to_vmem [thread:$0]  %s1836_s3, 1024, %s44_s17, [#allocation6], %s1281_s25, %s1281_s25, %s1282_s26  }
  0x34   :  { %1274 = dma.done.wait [#allocation3], 6144  }
  0x35   :  { %1275 = vsyncadd [#allocation3], 4294961152 }
  0x36   :  { %1276 = dma.done.wait [#allocation6], 2560  }
  0x37   :  { %1277 = vsyncadd [#allocation6], 4294964736  ;;  %v1287_v0 = vmov 0   ;;  %v1160_v1 = vld [vmem:[#allocation5] sm:$0xff]   ;;  %v1161_v2 = vld [vmem:[#allocation5 + $0x8] sm:$0xff]   ;;  %vm211_vm0 = vcmask 523264  }
  0x38   :  { %897 = vmatprep.subr.bf16.mxu0 %v1287_v0  ;;  %v1162_v3 = vld [vmem:[#allocation5 + $0x10] sm:$0xff]   ;;  %v1163_v4 = vld [vmem:[#allocation5 + $0x18] sm:$0xff]   ;;  %v1164_v5 = vld [vmem:[#allocation5 + $0x20] sm:$0xff]   ;;  %vm764_vm1 = vcmask 1041409   ;;  %vm766_vm2 = vcmask 1042434   ;;  %vm768_vm3 = vcmask 1043459  }
  0x39   :  { %898 = vmatpush1.bf16.msra.mxu0 %v1160_v1  ;;  %v1363_v6 = vld [vmem:[#allocation2] sm:$0xff]  ;;  %v1365_v7 = vld [vmem:[#allocation2 + $0x8] sm:$0xff]  ;;  %v1367_v8 = vld [vmem:[#allocation2 + $0x10] sm:$0xff]  ;;  %vm770_vm4 = vcmask 1044484   ;;  %vm772_vm5 = vcmask 1045509   ;;  %vm774_vm6 = vcmask 1046534  }
  0x3a   :  { %899 = vmatprep.subr.bf16.mxu0 %v1287_v0  ;;  %1846 = vst [vmem:[#allocation12_spill] sm:$0xff] %v1363_v6  ;;  %1847 = vst [vmem:[#allocation13_spill] sm:$0xff] %v1365_v7  ;;  %v1369_v9 = vld [vmem:[#allocation2 + $0x18] sm:$0xff]  ;;  %v1371_v10 = vld [vmem:[#allocation2 + $0x20] sm:$0xff]  ;;  %v109_v12 = vunpack.c.h.bf16 %v1363_v6  ;;  %v111_v13 = vunpack.c.h.bf16 %v1365_v7  ;;  %v113_v14 = vunpack.c.h.bf16 %v1367_v8  ;;  %vm776_vm7 = vcmask 1047559  }
  0x3b   :  { %v1373_v11 = vld [vmem:[#allocation2 + $0x28] sm:$0xff]  ;;  %v1379_v16 = vld [vmem:[#allocation2 + $0x30] sm:$0xff]  ;;  %v1381_v17 = vld [vmem:[#allocation2 + $0x38] sm:$0xff]  ;;  %v115_v19 = vunpack.c.h.bf16 %v1369_v9  ;;  %v117_v20 = vunpack.c.h.bf16 %v1371_v10 }
  0x3c   :  { %v1383_v18 = vld [vmem:[#allocation2 + $0x40] sm:$0xff]  ;;  %v119_v21 = vunpack.c.h.bf16 %v1373_v11  ;;  %v1390_v23 = vld [vmem:[#allocation2 + $0x48] sm:$0xff]  ;;  %v1392_v24 = vld [vmem:[#allocation2 + $0x50] sm:$0xff]  ;;  %v121_v26 = vunpack.c.h.bf16 %v1379_v16  ;;  %v123_v27 = vunpack.c.h.bf16 %v1381_v17  ;;  %v212_v29 = vsel %vm211_vm0, %v109_v12, 0.0 }
  0x3d   :  { %900 = vmatpush1.bf16.msra.mxu0 %v1161_v2  ;;  %v1394_v25 = vld [vmem:[#allocation2 + $0x58] sm:$0xff]  ;;  %v125_v28 = vunpack.c.h.bf16 %v1383_v18  ;;  %v1165_v30 = vld [vmem:[#allocation5 + $0x28] sm:$0xff]   ;;  %v1400_v31 = vld [vmem:[#allocation2 + $0x60] sm:$0xff]  ;;  %v127_v34 = vunpack.c.h.bf16 %v1390_v23  ;;  %v129_v35 = vunpack.c.h.bf16 %v1392_v24  ;;  %v213_v37 = vsel %vm211_vm0, %v111_v13, 0.0 }
  0x3e   :  { %901 = vmatprep.subr.bf16.mxu0 %v1287_v0  ;;  %v1402_v32 = vld [vmem:[#allocation2 + $0x68] sm:$0xff]  ;;  %v1404_v33 = vld [vmem:[#allocation2 + $0x70] sm:$0xff]  ;;  %v131_v36 = vunpack.c.h.bf16 %v1394_v25  ;;  %v1410_v38 = vld [vmem:[#allocation2 + $0x78] sm:$0xff]  ;;  %v133_v41 = vunpack.c.h.bf16 %v1400_v31  ;;  %v214_v44 = vadd.f32 %v213_v37, %v212_v29  ;;  %v228_v51 = vsel %vm211_vm0, %v113_v14, 0.0 }
  0x3f   :  { %v1412_v39 = vld [vmem:[#allocation2 + $0x80] sm:$0xff]  ;;  %v1414_v40 = vld [vmem:[#allocation2 + $0x88] sm:$0xff]  ;;  %v135_v42 = vunpack.c.h.bf16 %v1402_v32  ;;  %v137_v43 = vunpack.c.h.bf16 %v1404_v33  ;;  %v1419_v45 = vld [vmem:[#allocation2 + $0x90] sm:$0xff]  ;;  %v139_v48 = vunpack.c.h.bf16 %v1410_v38  ;;  %v229_v2 = vsel %vm211_vm0, %v115_v19, 0.0 }
  0x40   :  { %v1421_v46 = vld [vmem:[#allocation2 + $0x98] sm:$0xff]  ;;  %v1423_v47 = vld [vmem:[#allocation2 + $0xa0] sm:$0xff]  ;;  %v141_v49 = vunpack.c.h.bf16 %v1412_v39  ;;  %v143_v50 = vunpack.c.h.bf16 %v1414_v40  ;;  %v1430_v52 = vld [vmem:[#allocation2 + $0xa8] sm:$0xff]  ;;  %v145_v55 = vunpack.c.h.bf16 %v1419_v45  ;;  %v215_v58 = vrot.slane %v214_v44, 4 }
  0x41   :  { %902 = vmatpush1.bf16.msra.mxu0 %v1162_v3  ;;  %v1432_v53 = vld [vmem:[#allocation2 + $0xb0] sm:$0xff]  ;;  %v1434_v54 = vld [vmem:[#allocation2 + $0xb8] sm:$0xff]  ;;  %v1439_v59 = vld [vmem:[#allocation2 + $0xc0] sm:$0xff]  ;;  %v230_v62 = vadd.f32 %v229_v2, %v228_v51  ;;  %v245_v19 = vsel %vm211_vm0, %v119_v21, 0.0  ;;  %v260_v51 = vsel %vm211_vm0, %v121_v26, 0.0  ;;  %v261_v2 = vsel %vm211_vm0, %v123_v27, 0.0 }
  0x42   :  { %903 = vmatprep.subr.bf16.mxu0 %v1287_v0  ;;  %v1441_v60 = vld [vmem:[#allocation2 + $0xc8] sm:$0xff]  ;;  %v1443_v61 = vld [vmem:[#allocation2 + $0xd0] sm:$0xff]  ;;  %v1449_v3 = vld [vmem:[#allocation2 + $0xd8] sm:$0xff]  ;;  %v216_v29 = vadd.f32 %v215_v58, %v214_v44  ;;  %v262_v63 = vadd.f32 %v261_v2, %v260_v51  ;;  %v277_v21 = vsel %vm211_vm0, %v127_v34, 0.0  ;;  %v292_v26 = vsel %vm211_vm0, %v129_v35, 0.0 }
  0x43   :  { %v1166_v37 = vld [vmem:[#allocation5 + $0x30] sm:$0xff]   ;;  %v1460_v15 = vld [vmem:[#allocation2 + $0xf8] sm:$0xff]  ;;  %v231_v58 = vrot.slane %v230_v62, 4  ;;  %v293_v27 = vsel %vm211_vm0, %v131_v36, 0.0  ;;  %v308_v34 = vsel %vm211_vm0, %v133_v41, 0.0  ;;  %v309_v35 = vsel %vm211_vm0, %v135_v42, 0.0 }
  0x44   :  { %v1458_v22 = vld [vmem:[#allocation2 + $0xf0] sm:$0xff]  ;;  %1850 = vst [vmem:[#allocation16_spill] sm:$0xff] %v1460_v15  ;;  %v217_v44 = vrot.slane %v216_v29, 2  ;;  %v1167_v1 = vld [vmem:[#allocation5 + $0x38] sm:$0xff]   ;;  %v325_v42 = vsel %vm211_vm0, %v139_v48, 0.0 }
  0x45   :  { %904 = vmatpush1.bf16.msra.mxu0 %v1163_v4  ;;  %v1451_v4 = vld [vmem:[#allocation2 + $0xe0] sm:$0xff]  ;;  %v232_v12 = vadd.f32 %v231_v58, %v230_v62  ;;  %v294_v62 = vadd.f32 %v293_v27, %v292_v26 }
  0x46   :  { %905 = vmatprep.subr.bf16.mxu0 %v1287_v0  ;;  %1848 = vst [vmem:[#allocation14_spill] sm:$0xff] %v1451_v4  ;;  %v218_v13 = vadd.f32 %v217_v44, %v216_v29 }
  0x47   :  { %v233_v44 = vrot.slane %v232_v12, 2  ;;  %v295_v56 = vrot.slane %v294_v62, 4 }
  0x48   :  { %v219_v29 = vrot.slane %v218_v13, 1 }
  0x49   :  { %906 = vmatpush1.bf16.msra.mxu0 %v1164_v5  ;;  %v1453_v5 = vld [vmem:[#allocation2 + $0xe8] sm:$0xff]  ;;  %v234_v57 = vadd.f32 %v233_v44, %v232_v12 }
  0x4a   :  { %907 = vmatprep.subr.bf16.mxu0 %v1287_v0  ;;  %1849 = vst [vmem:[#allocation15_spill] sm:$0xff] %v1453_v5  ;;  %v1499_v58 = vadd.f32 %v219_v29, %v218_v13  ;;  %v1169_v13 = vld [vmem:[#allocation5 + $0x48] sm:$0xff]  }
  0x4d   :  { %908 = vmatpush1.bf16.msra.mxu0 %v1165_v30  ;;  %v244_v30 = vsel %vm211_vm0, %v117_v20, 0.0  ;;  %v276_v20 = vsel %vm211_vm0, %v125_v28, 0.0  ;;  %v263_v28 = vrot.slane %v262_v63, 4 }
  0x4e   :  { %909 = vmatprep.subr.bf16.mxu0 %v1287_v0  ;;  %v246_v14 = vadd.f32 %v245_v19, %v244_v30  ;;  %v1168_v30 = vld [vmem:[#allocation5 + $0x40] sm:$0xff]  }
  0x4f   :  { %v264_v51 = vadd.f32 %v263_v28, %v262_v63  ;;  %v235_v63 = vrot.slane %v234_v57, 1 }
  0x50   :  { %v247_v19 = vrot.slane %v246_v14, 4 }
  0x51   :  { %910 = vmatpush1.bf16.msra.mxu0 %v1166_v37  ;;  %v278_v37 = vadd.f32 %v277_v21, %v276_v20  ;;  %v310_v20 = vadd.f32 %v309_v35, %v308_v34  ;;  %v324_v21 = vsel %vm211_vm0, %v137_v43, 0.0  ;;  %v265_v26 = vrot.slane %v264_v51, 2 }
  0x52   :  { %911 = vmatprep.subr.bf16.mxu0 %v1287_v0  ;;  %v248_v36 = vadd.f32 %v247_v19, %v246_v14  ;;  %v296_v14 = vadd.f32 %v295_v56, %v294_v62  ;;  %v326_v12 = vadd.f32 %v325_v42, %v324_v21  ;;  %v340_v43 = vsel %vm211_vm0, %v141_v49, 0.0 }
  0x53   :  { %v279_v2 = vrot.slane %v278_v37, 4  ;;  %v266_v19 = vadd.f32 %v265_v26, %v264_v51  ;;  %v1511_v44 = vadd.f32 %v235_v63, %v234_v57  ;;  %v341_v62 = vsel %vm211_vm0, %v143_v50, 0.0  ;;  %v1170_v26 = vld [vmem:[#allocation5 + $0x50] sm:$0xff]  }
  0x54   :  { %v249_v41 = vrot.slane %v248_v36, 2  ;;  %v327_v35 = vrot.slane %v326_v12, 4 }
  0x55   :  { %912 = vmatpush1.bf16.msra.mxu0 %v1167_v1  ;;  %v280_v27 = vadd.f32 %v279_v2, %v278_v37  ;;  %v311_v1 = vrot.slane %v310_v20, 4  ;;  %v297_v37 = vrot.slane %v296_v14, 2  ;;  %v267_v2 = vrot.slane %v266_v19, 1 }
  0x56   :  { %913 = vmatprep.subr.bf16.mxu0 %v1287_v0  ;;  %v250_v29 = vadd.f32 %v249_v41, %v248_v36  ;;  %v328_v21 = vadd.f32 %v327_v35, %v326_v12  ;;  %v342_v41 = vadd.f32 %v341_v62, %v340_v43  ;;  %v1855_v62 = vunpack.c.h.bf16 %v1434_v54 }
  0x57   :  { %v281_v28 = vrot.slane %v280_v27, 2  ;;  %v312_v34 = vadd.f32 %v311_v1, %v310_v20  ;;  %v298_v36 = vadd.f32 %v297_v37, %v296_v14  ;;  %v1519_v57 = vadd.f32 %v267_v2, %v266_v19 }
  0x58   :  { %v251_v48 = vrot.slane %v250_v29, 1  ;;  %v356_v20 = vsel %vm211_vm0, %v145_v55, 0.0  ;;  %v329_v63 = vrot.slane %v328_v21, 2  ;;  %v343_v1 = vrot.slane %v342_v41, 4 }
  0x59   :  { %914 = vmatpush1.bf16.msra.mxu0 %v1168_v30  ;;  %v282_v56 = vadd.f32 %v281_v28, %v280_v27  ;;  %v313_v51 = vrot.slane %v312_v34, 2  ;;  %v299_v27 = vrot.slane %v298_v36, 1  ;;  %v1851_v14 = vunpack.c.h.bf16 %v1421_v46 }
  0x5a   :  { %915 = vmatprep.subr.bf16.mxu0 %v1287_v0  ;;  %v1517_v49 = vadd.f32 %v251_v48, %v250_v29  ;;  %v1852_v29 = vunpack.c.h.bf16 %v1423_v47  ;;  %v1853_v55 = vunpack.c.h.bf16 %v1430_v52  ;;  %v330_v37 = vadd.f32 %v329_v63, %v328_v21 }
  0x5b   :  { %v283_v30 = vrot.slane %v282_v56, 1  ;;  %v314_v42 = vadd.f32 %v313_v51, %v312_v34  ;;  %v357_v12 = vsel %vm211_vm0, %v1851_v14, 0.0  ;;  %v1536_v28 = vadd.f32 %v299_v27, %v298_v36 }
  0x5c   :  { %v372_v19 = vsel %vm211_vm0, %v1852_v29, 0.0  ;;  %v344_v34 = vadd.f32 %v343_v1, %v342_v41  ;;  %v358_v35 = vadd.f32 %v357_v12, %v356_v20  ;;  %v1854_v2 = vunpack.c.h.bf16 %v1432_v53 }
  0x5d   :  { %916 = vmatpush1.bf16.msra.mxu0 %v1169_v13  ;;  %v1525_v50 = vadd.f32 %v283_v30, %v282_v56  ;;  %v373_v13 = vsel %vm211_vm0, %v1853_v55, 0.0  ;;  %v315_v43 = vrot.slane %v314_v42, 1  ;;  %v389_v51 = vsel %vm211_vm0, %v1855_v62, 0.0  ;;  %v1171_v30 = vld [vmem:[#allocation5 + $0x58] sm:$0xff]  }
  0x5e   :  { %917 = vmatprep.subr.bf16.mxu0 %v1287_v0  ;;  %v374_v48 = vadd.f32 %v373_v13, %v372_v19  ;;  %v388_v56 = vsel %vm211_vm0, %v1854_v2, 0.0  ;;  %v331_v29 = vrot.slane %v330_v37, 1  ;;  %v345_v36 = vrot.slane %v344_v34, 2 }
  0x5f   :  { %v1544_v14 = vadd.f32 %v315_v43, %v314_v42  ;;  %v390_v27 = vadd.f32 %v389_v51, %v388_v56  ;;  %v359_v21 = vrot.slane %v358_v35, 4  ;;  %v1856_v20 = vunpack.c.h.bf16 %v1439_v59 }
  0x60   :  { %v375_v41 = vrot.slane %v374_v48, 4  ;;  %v1857_v1 = vunpack.c.h.bf16 %v1441_v60  ;;  %v1553_v19 = vadd.f32 %v331_v29, %v330_v37  ;;  %v1858_v2 = vunpack.c.h.bf16 %v1443_v61 }
  0x61   :  { %918 = vmatpush1.bf16.msra.mxu0 %v1170_v26  ;;  %v404_v63 = vsel %vm211_vm0, %v1856_v20, 0.0  ;;  %v346_v26 = vadd.f32 %v345_v36, %v344_v34  ;;  %v391_v42 = vrot.slane %v390_v27, 4  ;;  %v360_v13 = vadd.f32 %v359_v21, %v358_v35 }
  0x62   :  { %919 = vmatprep.subr.bf16.mxu0 %v1287_v0  ;;  %v405_v12 = vsel %vm211_vm0, %v1857_v1, 0.0  ;;  %v376_v43 = vadd.f32 %v375_v41, %v374_v48  ;;  %v420_v0 = vsel %vm211_vm0, %v1858_v2, 0.0  ;;  %v1859_v56 = vunpack.c.h.bf16 %v1449_v3 }
  0x63   :  { %v406_v55 = vadd.f32 %v405_v12, %v404_v63  ;;  %v347_v51 = vrot.slane %v346_v26, 1  ;;  %v392_v20 = vadd.f32 %v391_v42, %v390_v27  ;;  %v361_v37 = vrot.slane %v360_v13, 2 }
  0x64   :  { %v421_v62 = vsel %vm211_vm0, %v1859_v56, 0.0  ;;  %v377_v29 = vrot.slane %v376_v43, 2  ;;  %v1860_v34 = vunpack.c.h.bf16 %v1451_v4  ;;  %v1861_v48 = vunpack.c.h.bf16 %v1453_v5 }
  0x65   :  { %920 = vmatpush1.bf16.msra.mxu0 %v1171_v30  ;;  %v407_v7 = vrot.slane %v406_v55, 4  ;;  %v422_v1 = vadd.f32 %v421_v62, %v420_v0  ;;  %v1567_v21 = vadd.f32 %v347_v51, %v346_v26  ;;  %v393_v41 = vrot.slane %v392_v20, 2 }
  0x66   :  { %v436_v35 = vsel %vm211_vm0, %v1860_v34, 0.0  ;;  %v437_v36 = vsel %vm211_vm0, %v1861_v48, 0.0  ;;  %v362_v30 = vadd.f32 %v361_v37, %v360_v13  ;;  %v378_v2 = vadd.f32 %v377_v29, %v376_v43 }
  0x67   :  { %v408_v63 = vadd.f32 %v407_v7, %v406_v55  ;;  %v423_v12 = vrot.slane %v422_v1, 4  ;;  %v438_v27 = vadd.f32 %v437_v36, %v436_v35  ;;  %v1862_v42 = vunpack.c.h.bf16 %v1458_v22 }
  0x68   :  { %v394_v56 = vadd.f32 %v393_v41, %v392_v20  ;;  %v1863_v34 = vunpack.c.h.bf16 %v1460_v15  ;;  %v363_v48 = vrot.slane %v362_v30, 1  ;;  %v379_v26 = vrot.slane %v378_v2, 1 }
  0x69   :  { %v452_v0 = vsel %vm211_vm0, %v1862_v42, 0.0  ;;  %v409_v62 = vrot.slane %v408_v63, 2  ;;  %v424_v6 = vadd.f32 %v423_v12, %v422_v1  ;;  %v439_v51 = vrot.slane %v438_v27, 4 }
  0x6a   :  { %v453_v5 = vsel %vm211_vm0, %v1863_v34, 0.0  ;;  %v395_v7 = vrot.slane %v394_v56, 1  ;;  %v590_v43 = vpack.c.bf16 %v1499_v58, %v1499_v58  ;;  %v364_v37 = vadd.f32 %v363_v48, %v362_v30 }
  0x6b   :  { %v454_v4 = vadd.f32 %v453_v5, %v452_v0  ;;  %v410_v55 = vadd.f32 %v409_v62, %v408_v63  ;;  %v425_v13 = vrot.slane %v424_v6, 2  ;;  %v380_v29 = vadd.f32 %v379_v26, %v378_v2 }
  0x6c   :  { %v440_v35 = vadd.f32 %v439_v51, %v438_v27  ;;  %v396_v1 = vadd.f32 %v395_v7, %v394_v56  ;;  %v592_v12 = vpack.c.bf16 %v1511_v44, %v1511_v44  ;;  %v594_v63 = vpack.c.bf16 %v1517_v49, %v1517_v49 }
  0x6d   :  { %v455_v20 = vrot.slane %v454_v4, 4  ;;  %v411_v36 = vrot.slane %v410_v55, 1  ;;  %v426_v41 = vadd.f32 %v425_v13, %v424_v6  ;;  %v596_v58 = vpack.c.bf16 %v1519_v57, %v1519_v57 }
  0x6e   :  { %v441_v42 = vrot.slane %v440_v35, 2  ;;  %v598_v27 = vpack.c.bf16 %v1525_v50, %v1525_v50  ;;  %v600_v6 = vpack.c.bf16 %v1536_v28, %v1536_v28  ;;  %v604_v49 = vpack.c.bf16 %v1553_v19, %v1553_v19 }
  0x6f   :  { %v456_v5 = vadd.f32 %v455_v20, %v454_v4  ;;  %v412_v30 = vadd.f32 %v411_v36, %v410_v55  ;;  %v427_v2 = vrot.slane %v426_v41, 1  ;;  %v602_v4 = vpack.c.bf16 %v1544_v14, %v1544_v14 }
  0x70   :  { %v442_v44 = vadd.f32 %v441_v42, %v440_v35  ;;  %v606_v56 = vpack.c.bf16 %v1567_v21, %v1567_v21  ;;  %v608_v62 = vpack.c.bf16 %v364_v37, %v364_v37  ;;  %v610_v34 = vpack.c.bf16 %v380_v29, %v380_v29 }
  0x71   :  { %v457_v0 = vrot.slane %v456_v5, 2  ;;  %v428_v57 = vadd.f32 %v427_v2, %v426_v41  ;;  %v612_v28 = vpack.c.bf16 %v396_v1, %v396_v1  ;;  %v614_v26 = vpack.c.bf16 %v412_v30, %v412_v30 }
  0x72   :  { %v443_v50 = vrot.slane %v442_v44, 1  ;;  %v717_v7 = vunpack.c.l.b16 %v590_v43  ;;  %v719_v55 = vunpack.c.l.b16 %v592_v12  ;;  %v721_v14 = vunpack.c.l.b16 %v594_v63 }
  0x73   :  { %v458_v48 = vadd.f32 %v457_v0, %v456_v5  ;;  %v616_v51 = vpack.c.bf16 %v428_v57, %v428_v57  ;;  %v723_v19 = vunpack.c.l.b16 %v596_v58  ;;  %v725_v20 = vunpack.c.l.b16 %v598_v27 }
  0x74   :  { %v444_v13 = vadd.f32 %v443_v50, %v442_v44  ;;  %v727_v36 = vunpack.c.l.b16 %v600_v6  ;;  %v729_v41 = vunpack.c.l.b16 %v602_v4  ;;  %v731_v42 = vunpack.c.l.b16 %v604_v49 }
  0x75   :  { %v459_v35 = vrot.slane %v458_v48, 1  ;;  %v733_v21 = vunpack.c.l.b16 %v606_v56  ;;  %v735_v2 = vunpack.c.l.b16 %v608_v62  ;;  %v737_v15 = vunpack.c.l.b16 %v610_v34 }
  0x76   :  { %v618_v29 = vpack.c.bf16 %v444_v13, %v444_v13  ;;  %v739_v5 = vunpack.c.l.b16 %v612_v28  ;;  %v741_v1 = vunpack.c.l.b16 %v614_v26  ;;  %v743_v30 = vunpack.c.l.b16 %v616_v51 }
  0x77   :  { %v460_v37 = vadd.f32 %v459_v35, %v458_v48  ;;  %v778_v0 = vsel %vm764_vm1, %v719_v55, %v717_v7  ;;  %v792_v58 = vsel %vm764_vm1, %v735_v2, %v733_v21  ;;  %v112_v44 = vunpack.c.l.bf16 %v1367_v8  ;;  %v1864_v21 = vld [vmem:[#allocation14_spill] sm:$0xff] }
  0x78   :  { %v745_v12 = vunpack.c.l.b16 %v618_v29  ;;  %v779_v63 = vsel %vm766_vm2, %v721_v14, %v778_v0  ;;  %v793_v6 = vsel %vm766_vm2, %v737_v15, %v792_v58  ;;  %v114_v4 = vunpack.c.l.bf16 %v1369_v9  ;;  %v1865_v29 = vld [vmem:[#allocation15_spill] sm:$0xff]  ;;  %v1867_v0 = vld [vmem:[#allocation12_spill] sm:$0xff] }
  0x79   :  { %v620_v43 = vpack.c.bf16 %v460_v37, %v460_v37  ;;  %v780_v27 = vsel %vm768_vm3, %v723_v19, %v779_v63  ;;  %v794_v56 = vsel %vm768_vm3, %v739_v5, %v793_v6  ;;  %v116_v62 = vunpack.c.l.bf16 %v1371_v10 }
  0x7a   :  { %v781_v57 = vsel %vm770_vm4, %v725_v20, %v780_v27  ;;  %v795_v50 = vsel %vm770_vm4, %v741_v1, %v794_v56  ;;  %v118_v48 = vunpack.c.l.bf16 %v1373_v11  ;;  %v120_v28 = vunpack.c.l.bf16 %v1379_v16  ;;  %v1866_v1 = vld [vmem:[#allocation16_spill] sm:$0xff] }
  0x7b   :  { %v747_v49 = vunpack.c.l.b16 %v620_v43  ;;  %v782_v34 = vsel %vm772_vm5, %v727_v36, %v781_v57  ;;  %v796_v8 = vsel %vm772_vm5, %v743_v30, %v795_v50  ;;  %v122_v9 = vunpack.c.l.bf16 %v1381_v17 }
  0x7c   :  { %v783_v15 = vsel %vm774_vm6, %v729_v41, %v782_v34  ;;  %v124_v26 = vunpack.c.l.bf16 %v1383_v18  ;;  %v797_v10 = vsel %vm774_vm6, %v745_v12, %v796_v8  ;;  %v126_v7 = vunpack.c.l.bf16 %v1390_v23  ;;  %v1869_v12 = vld [vmem:[#allocation13_spill] sm:$0xff] }
  0x7d   :  { %v784_v51 = vsel %vm776_vm7, %v731_v42, %v783_v15  ;;  %v128_v55 = vunpack.c.l.bf16 %v1392_v24  ;;  %v798_v11 = vsel %vm776_vm7, %v747_v49, %v797_v10  ;;  %v130_v16 = vunpack.c.l.bf16 %v1394_v25 }
  0x7e   :  { %v132_v14 = vunpack.c.l.bf16 %v1400_v31  ;;  %v134_v13 = vunpack.c.l.bf16 %v1402_v32  ;;  %v814_v35 = vpack.c.b16 %v798_v11, %v784_v51  ;;  %v136_v17 = vunpack.c.l.bf16 %v1404_v33 }
  0x7f   :  { %v138_v18 = vunpack.c.l.bf16 %v1410_v38  ;;  %v140_v19 = vunpack.c.l.bf16 %v1412_v39  ;;  %v142_v20 = vunpack.c.l.bf16 %v1414_v40  ;;  %v144_v23 = vunpack.c.l.bf16 %v1419_v45 }
  0x80   :  { %v146_v24 = vunpack.c.l.bf16 %v1421_v46  ;;  %v148_v36 = vunpack.c.l.bf16 %v1423_v47  ;;  %1111 = vmatprep.mubr.msk.bf16.mxu0 %vm211_vm0, %v814_v35  ;;  %v150_v25 = vunpack.c.l.bf16 %v1430_v52  ;;  %v152_v31 = vunpack.c.l.bf16 %v1432_v53 }
  0x81   :  { %v154_v32 = vunpack.c.l.bf16 %v1434_v54  ;;  %v156_v33 = vunpack.c.l.bf16 %v1439_v59  ;;  %v158_v38 = vunpack.c.l.bf16 %v1441_v60  ;;  %v160_v41 = vunpack.c.l.bf16 %v1443_v61 }
  0x82   :  { %v162_v42 = vunpack.c.l.bf16 %v1449_v3  ;;  %v1868_v43 = vunpack.c.l.bf16 %v1867_v0  ;;  %v1870_v63 = vunpack.c.l.bf16 %v1869_v12  ;;  %v221_v27 = vadd.f32 %v114_v4, %v112_v44 }
  0x83   :  { %v237_v6 = vadd.f32 %v118_v48, %v116_v62  ;;  %v253_v49 = vadd.f32 %v122_v9, %v120_v28  ;;  %v269_v57 = vadd.f32 %v126_v7, %v124_v26  ;;  %v285_v34 = vadd.f32 %v130_v16, %v128_v55 }
  0x84   :  { %v204_v58 = vadd.f32 %v1870_v63, %v1868_v43  ;;  %v301_v50 = vadd.f32 %v134_v13, %v132_v14  ;;  %v317_v15 = vadd.f32 %v138_v18, %v136_v17  ;;  %v222_v8 = vrot.slane %v221_v27, 4 }
  0x85   :  { %v238_v51 = vrot.slane %v237_v6, 4  ;;  %v254_v10 = vrot.slane %v253_v49, 4  ;;  %v270_v11 = vrot.slane %v269_v57, 4  ;;  %v286_v5 = vrot.slane %v285_v34, 4 }
  0x86   :  { %v205_v56 = vrot.slane %v204_v58, 4  ;;  %v302_v30 = vrot.slane %v301_v50, 4  ;;  %v318_v2 = vrot.slane %v317_v15, 4  ;;  %v223_v0 = vadd.f32 %v222_v8, %v221_v27 }
  0x87   :  { %v239_v37 = vadd.f32 %v238_v51, %v237_v6  ;;  %v255_v12 = vadd.f32 %v254_v10, %v253_v49  ;;  %v271_v43 = vadd.f32 %v270_v11, %v269_v57  ;;  %v287_v4 = vadd.f32 %v286_v5, %v285_v34 }
  0x88   :  { %v206_v35 = vadd.f32 %v205_v56, %v204_v58  ;;  %v303_v62 = vadd.f32 %v302_v30, %v301_v50  ;;  %v319_v48 = vadd.f32 %v318_v2, %v317_v15  ;;  %v224_v28 = vrot.slane %v223_v0, 2 }
  0x89   :  { %v240_v9 = vrot.slane %v239_v37, 2  ;;  %v256_v26 = vrot.slane %v255_v12, 2  ;;  %v272_v7 = vrot.slane %v271_v43, 2  ;;  %v288_v16 = vrot.slane %v287_v4, 2 }
  0x8a   :  { %v207_v44 = vrot.slane %v206_v35, 2  ;;  %v304_v14 = vrot.slane %v303_v62, 2  ;;  %v320_v13 = vrot.slane %v319_v48, 2  ;;  %v225_v17 = vadd.f32 %v224_v28, %v223_v0 }
  0x8b   :  { %v241_v18 = vadd.f32 %v240_v9, %v239_v37  ;;  %v257_v63 = vadd.f32 %v256_v26, %v255_v12  ;;  %v273_v58 = vadd.f32 %v272_v7, %v271_v43  ;;  %v289_v6 = vadd.f32 %v288_v16, %v287_v4 }
  0x8c   :  { %v208_v55 = vadd.f32 %v207_v44, %v206_v35  ;;  %v305_v49 = vadd.f32 %v304_v14, %v303_v62  ;;  %v321_v57 = vadd.f32 %v320_v13, %v319_v48  ;;  %v226_v56 = vrot.slane %v225_v17, 1 }
  0x8d   :  { %v242_v5 = vrot.slane %v241_v18, 1  ;;  %v258_v30 = vrot.slane %v257_v63, 1  ;;  %v274_v2 = vrot.slane %v273_v58, 1  ;;  %v290_v50 = vrot.slane %v289_v6, 1 }
  0x8e   :  { %v209_v27 = vrot.slane %v208_v55, 1  ;;  %v306_v15 = vrot.slane %v305_v49, 1  ;;  %v322_v8 = vrot.slane %v321_v57, 1  ;;  %v1644_v51 = vadd.f32 %v226_v56, %v225_v17 }
  0x8f   :  { %v1646_v10 = vadd.f32 %v242_v5, %v241_v18  ;;  %v1648_v37 = vadd.f32 %v258_v30, %v257_v63  ;;  %v1650_v11 = vadd.f32 %v274_v2, %v273_v58  ;;  %v1652_v35 = vadd.f32 %v290_v50, %v289_v6 }
  0x90   :  { %v1642_v34 = vadd.f32 %v209_v27, %v208_v55  ;;  %v1654_v0 = vadd.f32 %v306_v15, %v305_v49  ;;  %v1656_v12 = vadd.f32 %v322_v8, %v321_v57  ;;  %v333_v43 = vadd.f32 %v142_v20, %v140_v19 }
  0x91   :  { %v349_v44 = vadd.f32 %v146_v24, %v144_v23  ;;  %v365_v4 = vadd.f32 %v150_v25, %v148_v36  ;;  %v381_v62 = vadd.f32 %v154_v32, %v152_v31  ;;  %v397_v39 = vadd.f32 %v158_v38, %v156_v33 }
  0x92   :  { %v334_v40 = vrot.slane %v333_v43, 4  ;;  %v413_v45 = vadd.f32 %v162_v42, %v160_v41  ;;  %v1871_v46 = vunpack.c.l.bf16 %v1864_v21  ;;  %v1872_v47 = vunpack.c.l.bf16 %v1865_v29 }
  0x93   :  { %v1873_v53 = vunpack.c.l.bf16 %v1458_v22  ;;  %v1874_v54 = vunpack.c.l.bf16 %v1866_v1  ;;  %v350_v59 = vrot.slane %v349_v44, 4  ;;  %v366_v20 = vrot.slane %v365_v4, 4 }
  0x94   :  { %v429_v52 = vadd.f32 %v1872_v47, %v1871_v46  ;;  %v382_v60 = vrot.slane %v381_v62, 4  ;;  %v398_v23 = vrot.slane %v397_v39, 4  ;;  %v335_v24 = vadd.f32 %v334_v40, %v333_v43 }
  0x95   :  { %v445_v19 = vadd.f32 %v1874_v54, %v1873_v53  ;;  %v414_v36 = vrot.slane %v413_v45, 4  ;;  %v351_v3 = vadd.f32 %v350_v59, %v349_v44  ;;  %v367_v31 = vadd.f32 %v366_v20, %v365_v4 }
  0x96   :  { %v430_v61 = vrot.slane %v429_v52, 4  ;;  %v383_v32 = vadd.f32 %v382_v60, %v381_v62  ;;  %v399_v33 = vadd.f32 %v398_v23, %v397_v39  ;;  %v336_v38 = vrot.slane %v335_v24, 2 }
  0x97   :  { %v446_v25 = vrot.slane %v445_v19, 4  ;;  %v415_v41 = vadd.f32 %v414_v36, %v413_v45  ;;  %v352_v22 = vrot.slane %v351_v3, 2  ;;  %v368_v29 = vrot.slane %v367_v31, 2 }
  0x98   :  { %v431_v42 = vadd.f32 %v430_v61, %v429_v52  ;;  %v384_v1 = vrot.slane %v383_v32, 2  ;;  %v400_v48 = vrot.slane %v399_v33, 2  ;;  %v337_v28 = vadd.f32 %v336_v38, %v335_v24 }
  0x99   :  { %v447_v21 = vadd.f32 %v446_v25, %v445_v19  ;;  %v416_v9 = vrot.slane %v415_v41, 2  ;;  %v353_v55 = vadd.f32 %v352_v22, %v351_v3  ;;  %v369_v16 = vadd.f32 %v368_v29, %v367_v31  ;;  %v1706_v31 = vld [vmem:[#allocation2 + $0x100] sm:$0xff] }
  0x9a   :  { %v432_v26 = vrot.slane %v431_v42, 2  ;;  %v385_v14 = vadd.f32 %v384_v1, %v383_v32  ;;  %v401_v13 = vadd.f32 %v400_v48, %v399_v33  ;;  %v338_v17 = vrot.slane %v337_v28, 1 }
  0x9b   :  { %v448_v7 = vrot.slane %v447_v21, 2  ;;  %v417_v18 = vadd.f32 %v416_v9, %v415_v41  ;;  %v354_v27 = vrot.slane %v353_v55, 1  ;;  %v370_v6 = vrot.slane %v369_v16, 1  ;;  %v1717_v9 = vld [vmem:[#allocation2 + $0x128] sm:$0xff] }
  0x9c   :  { %v433_v63 = vadd.f32 %v432_v26, %v431_v42  ;;  %v386_v49 = vrot.slane %v385_v14, 1  ;;  %v402_v57 = vrot.slane %v401_v13, 1  ;;  %v339_v56 = vadd.f32 %v338_v17, %v337_v28  ;;  %v1710_v42 = vld [vmem:[#allocation2 + $0x110] sm:$0xff]  ;;  %v1715_v28 = vld [vmem:[#allocation2 + $0x120] sm:$0xff] }
  0x9d   :  { %v449_v58 = vadd.f32 %v448_v7, %v447_v21  ;;  %v418_v5 = vrot.slane %v417_v18, 1  ;;  %v355_v50 = vadd.f32 %v354_v27, %v353_v55  ;;  %v371_v15 = vadd.f32 %v370_v6, %v369_v16  ;;  %v1712_v21 = vld [vmem:[#allocation2 + $0x118] sm:$0xff]  ;;  %v1721_v55 = vld [vmem:[#allocation2 + $0x130] sm:$0xff] }
  0x9e   :  { %v434_v30 = vrot.slane %v433_v63, 1  ;;  %v387_v8 = vadd.f32 %v386_v49, %v385_v14  ;;  %v403_v43 = vadd.f32 %v402_v57, %v401_v13  ;;  %v589_v39 = vpack.c.bf16 %v1642_v34, %v1642_v34  ;;  %v1723_v16 = vld [vmem:[#allocation2 + $0x138] sm:$0xff] }
  0x9f   :  { %v450_v2 = vrot.slane %v449_v58, 1  ;;  %v419_v44 = vadd.f32 %v418_v5, %v417_v18  ;;  %v591_v40 = vpack.c.bf16 %v1644_v51, %v1644_v51  ;;  %v593_v45 = vpack.c.bf16 %v1646_v10, %v1646_v10  ;;  %v1739_v5 = vld [vmem:[#allocation2 + $0x158] sm:$0xff] }
  0xa0   :  { %v435_v4 = vadd.f32 %v434_v30, %v433_v63  ;;  %v595_v46 = vpack.c.bf16 %v1648_v37, %v1648_v37  ;;  %v597_v47 = vpack.c.bf16 %v1650_v11, %v1650_v11  ;;  %v599_v52 = vpack.c.bf16 %v1652_v35, %v1652_v35  ;;  %v1729_v63 = vld [vmem:[#allocation2 + $0x140] sm:$0xff] }
  0xa1   :  { %v451_v62 = vadd.f32 %v450_v2, %v449_v58  ;;  %v601_v53 = vpack.c.bf16 %v1654_v0, %v1654_v0  ;;  %v603_v34 = vpack.c.bf16 %v1656_v12, %v1656_v12  ;;  %v605_v54 = vpack.c.bf16 %v339_v56, %v339_v56  ;;  %v1708_v12 = vld [vmem:[#allocation2 + $0x108] sm:$0xff]  ;;  %v1737_v56 = vld [vmem:[#allocation2 + $0x150] sm:$0xff] }
  0xa2   :  { %v607_v51 = vpack.c.bf16 %v355_v50, %v355_v50  ;;  %v609_v19 = vpack.c.bf16 %v371_v15, %v371_v15  ;;  %v611_v59 = vpack.c.bf16 %v387_v8, %v387_v8  ;;  %v613_v10 = vpack.c.bf16 %v403_v43, %v403_v43  ;;  %v1731_v58 = vld [vmem:[#allocation2 + $0x148] sm:$0xff]  ;;  %v1745_v8 = vld [vmem:[#allocation2 + $0x160] sm:$0xff] }
  0xa3   :  { %v615_v20 = vpack.c.bf16 %v419_v44, %v419_v44  ;;  %v617_v60 = vpack.c.bf16 %v435_v4, %v435_v4  ;;  %v619_v37 = vpack.c.bf16 %v451_v62, %v451_v62  ;;  %v716_v23 = vunpack.c.l.b16 %v589_v39  ;;  %v1747_v43 = vld [vmem:[#allocation2 + $0x168] sm:$0xff]  ;;  %v1749_v44 = vld [vmem:[#allocation2 + $0x170] sm:$0xff] }
  0xa4   :  { %v718_v24 = vunpack.c.l.b16 %v591_v40  ;;  %v720_v11 = vunpack.c.l.b16 %v593_v45  ;;  %v722_v36 = vunpack.c.l.b16 %v595_v46  ;;  %v724_v61 = vunpack.c.l.b16 %v597_v47  ;;  %v1755_v45 = vld [vmem:[#allocation2 + $0x178] sm:$0xff] }
  0xa5   :  { %v726_v35 = vunpack.c.l.b16 %v599_v52  ;;  %v728_v25 = vunpack.c.l.b16 %v601_v53  ;;  %v730_v3 = vunpack.c.l.b16 %v603_v34  ;;  %v732_v0 = vunpack.c.l.b16 %v605_v54 }
  0xa6   :  { %v734_v32 = vunpack.c.l.b16 %v607_v51  ;;  %v736_v33 = vunpack.c.l.b16 %v609_v19  ;;  %v738_v38 = vunpack.c.l.b16 %v611_v59  ;;  %v740_v41 = vunpack.c.l.b16 %v613_v10 }
  0xa7   :  { %v742_v22 = vunpack.c.l.b16 %v615_v20  ;;  %v744_v29 = vunpack.c.l.b16 %v617_v60  ;;  %v746_v1 = vunpack.c.l.b16 %v619_v37  ;;  %v765_v48 = vsel %vm764_vm1, %v718_v24, %v716_v23 }
  0xa8   :  { %v767_v26 = vsel %vm766_vm2, %v720_v11, %v765_v48  ;;  %v785_v7 = vsel %vm764_vm1, %v734_v32, %v732_v0  ;;  %v173_v14 = vunpack.c.h.bf16 %v1706_v31  ;;  %v175_v13 = vunpack.c.h.bf16 %v1708_v12 }
  0xa9   :  { %v769_v17 = vsel %vm768_vm3, %v722_v36, %v767_v26  ;;  %v786_v18 = vsel %vm766_vm2, %v736_v33, %v785_v7  ;;  %v177_v27 = vunpack.c.h.bf16 %v1710_v42  ;;  %v179_v6 = vunpack.c.h.bf16 %v1712_v21 }
  0xaa   :  { %v771_v49 = vsel %vm770_vm4, %v724_v61, %v769_v17  ;;  %v787_v57 = vsel %vm768_vm3, %v738_v38, %v786_v18  ;;  %v181_v30 = vunpack.c.h.bf16 %v1715_v28  ;;  %v183_v2 = vunpack.c.h.bf16 %v1717_v9 }
  0xab   :  { %v773_v50 = vsel %vm772_vm5, %v726_v35, %v771_v49  ;;  %v788_v15 = vsel %vm770_vm4, %v740_v41, %v787_v57  ;;  %v185_v4 = vunpack.c.h.bf16 %v1721_v55  ;;  %v187_v62 = vunpack.c.h.bf16 %v1723_v16 }
  0xac   :  { %v775_v39 = vsel %vm774_vm6, %v728_v25, %v773_v50  ;;  %v789_v40 = vsel %vm772_vm5, %v742_v22, %v788_v15  ;;  %v189_v46 = vunpack.c.h.bf16 %v1729_v63  ;;  %v191_v47 = vunpack.c.h.bf16 %v1731_v58 }
  0xad   :  { %v777_v52 = vsel %vm776_vm7, %v730_v3, %v775_v39  ;;  %v790_v53 = vsel %vm774_vm6, %v744_v29, %v789_v40  ;;  %v193_v34 = vunpack.c.h.bf16 %v1737_v56  ;;  %v195_v54 = vunpack.c.h.bf16 %v1739_v5 }
  0xae   :  { %v791_v51 = vsel %vm776_vm7, %v746_v1, %v790_v53  ;;  %v197_v19 = vunpack.c.h.bf16 %v1745_v8  ;;  %v199_v59 = vunpack.c.h.bf16 %v1747_v43  ;;  %v201_v10 = vunpack.c.h.bf16 %v1749_v44 }
  0xaf   :  { %v813_v20 = vpack.c.b16 %v791_v51, %v777_v52  ;;  %v203_v60 = vunpack.c.h.bf16 %v1755_v45  ;;  %v468_v37 = vsel %vm211_vm0, %v173_v14, 0.0  ;;  %v469_v23 = vsel %vm211_vm0, %v175_v13, 0.0 }
  0xb0   :  { %v470_v24 = vadd.f32 %v469_v23, %v468_v37  ;;  %v484_v11 = vsel %vm211_vm0, %v177_v27, 0.0  ;;  %v485_v36 = vsel %vm211_vm0, %v179_v6, 0.0  ;;  %v500_v61 = vsel %vm211_vm0, %v181_v30, 0.0 }
  0xb1   :  { %930 = vmatmul.mubr.bf16.vlgmr.msra.gmra.mrb[0].mxu0 %v813_v20  ;;  %v486_v35 = vadd.f32 %v485_v36, %v484_v11  ;;  %v501_v25 = vsel %vm211_vm0, %v183_v2, 0.0  ;;  %v516_v3 = vsel %vm211_vm0, %v185_v4, 0.0  ;;  %v517_v0 = vsel %vm211_vm0, %v187_v62, 0.0 }
  0xb2   :  { %v471_v32 = vrot.slane %v470_v24, 4  ;;  %v502_v33 = vadd.f32 %v501_v25, %v500_v61  ;;  %v518_v38 = vadd.f32 %v517_v0, %v516_v3  ;;  %v532_v41 = vsel %vm211_vm0, %v189_v46, 0.0 }
  0xb3   :  { %v487_v22 = vrot.slane %v486_v35, 4  ;;  %v533_v29 = vsel %vm211_vm0, %v191_v47, 0.0  ;;  %v548_v1 = vsel %vm211_vm0, %v193_v34, 0.0  ;;  %v549_v48 = vsel %vm211_vm0, %v195_v54, 0.0 }
  0xb4   :  { %v472_v26 = vadd.f32 %v471_v32, %v470_v24  ;;  %v503_v7 = vrot.slane %v502_v33, 4  ;;  %v519_v14 = vrot.slane %v518_v38, 4  ;;  %v534_v13 = vadd.f32 %v533_v29, %v532_v41 }
  0xb5   :  { %v488_v17 = vadd.f32 %v487_v22, %v486_v35  ;;  %v550_v18 = vadd.f32 %v549_v48, %v548_v1  ;;  %v564_v27 = vsel %vm211_vm0, %v197_v19, 0.0  ;;  %v565_v6 = vsel %vm211_vm0, %v199_v59, 0.0 }
  0xb6   :  { %v473_v49 = vrot.slane %v472_v26, 2  ;;  %v504_v57 = vadd.f32 %v503_v7, %v502_v33  ;;  %v520_v30 = vadd.f32 %v519_v14, %v518_v38  ;;  %v535_v2 = vrot.slane %v534_v13, 4 }
  0xb7   :  { %v489_v50 = vrot.slane %v488_v17, 2  ;;  %v551_v15 = vrot.slane %v550_v18, 4  ;;  %v566_v4 = vadd.f32 %v565_v6, %v564_v27  ;;  %v580_v62 = vsel %vm211_vm0, %v201_v10, 0.0 }
  0xb8   :  { %v474_v39 = vadd.f32 %v473_v49, %v472_v26  ;;  %v505_v40 = vrot.slane %v504_v57, 2  ;;  %v521_v46 = vrot.slane %v520_v30, 2  ;;  %v536_v47 = vadd.f32 %v535_v2, %v534_v13 }
  0xb9   :  { %v490_v52 = vadd.f32 %v489_v50, %v488_v17  ;;  %v552_v53 = vadd.f32 %v551_v15, %v550_v18  ;;  %v567_v34 = vrot.slane %v566_v4, 4  ;;  %v581_v54 = vsel %vm211_vm0, %v203_v60, 0.0 }
  0xba   :  { %v475_v51 = vrot.slane %v474_v39, 1  ;;  %v506_v19 = vadd.f32 %v505_v40, %v504_v57  ;;  %v522_v59 = vadd.f32 %v521_v46, %v520_v30  ;;  %v537_v20 = vrot.slane %v536_v47, 2 }
  0xbb   :  { %v491_v37 = vrot.slane %v490_v52, 1  ;;  %v553_v23 = vrot.slane %v552_v53, 2  ;;  %v568_v24 = vadd.f32 %v567_v34, %v566_v4  ;;  %v582_v11 = vadd.f32 %v581_v54, %v580_v62 }
  0xbc   :  { %v476_v36 = vadd.f32 %v475_v51, %v474_v39  ;;  %v507_v61 = vrot.slane %v506_v19, 1  ;;  %v523_v10 = vrot.slane %v522_v59, 1  ;;  %v538_v35 = vadd.f32 %v537_v20, %v536_v47 }
  0xbd   :  { %v492_v25 = vadd.f32 %v491_v37, %v490_v52  ;;  %v554_v3 = vadd.f32 %v553_v23, %v552_v53  ;;  %v569_v0 = vrot.slane %v568_v24, 2  ;;  %v583_v32 = vrot.slane %v582_v11, 4 }
  0xbe   :  { %v508_v33 = vadd.f32 %v507_v61, %v506_v19  ;;  %v524_v38 = vadd.f32 %v523_v10, %v522_v59  ;;  %v539_v41 = vrot.slane %v538_v35, 1  ;;  %v622_v60 = vpack.c.bf16 %v476_v36, %v476_v36 }
  0xbf   :  { %v555_v22 = vrot.slane %v554_v3, 1  ;;  %v570_v29 = vadd.f32 %v569_v0, %v568_v24  ;;  %v584_v1 = vadd.f32 %v583_v32, %v582_v11  ;;  %v624_v48 = vpack.c.bf16 %v492_v25, %v492_v25 }
  0xc0   :  { %v540_v26 = vadd.f32 %v539_v41, %v538_v35  ;;  %v626_v7 = vpack.c.bf16 %v508_v33, %v508_v33  ;;  %v628_v14 = vpack.c.bf16 %v524_v38, %v524_v38  ;;  %v749_v13 = vunpack.c.l.b16 %v622_v60 }
  0xc1   :  { %v556_v17 = vadd.f32 %v555_v22, %v554_v3  ;;  %v571_v18 = vrot.slane %v570_v29, 1  ;;  %v585_v27 = vrot.slane %v584_v1, 2  ;;  %v751_v6 = vunpack.c.l.b16 %v624_v48 }
  0xc2   :  { %v630_v49 = vpack.c.bf16 %v540_v26, %v540_v26  ;;  %v753_v57 = vunpack.c.l.b16 %v626_v7  ;;  %v755_v30 = vunpack.c.l.b16 %v628_v14  ;;  %v172_v2 = vunpack.c.l.bf16 %v1706_v31 }
  0xc3   :  { %v572_v50 = vadd.f32 %v571_v18, %v570_v29  ;;  %v586_v15 = vadd.f32 %v585_v27, %v584_v1  ;;  %v632_v4 = vpack.c.bf16 %v556_v17, %v556_v17  ;;  %v806_v62 = vsel %vm764_vm1, %v751_v6, %v749_v13 }
  0xc4   :  { %v757_v39 = vunpack.c.l.b16 %v630_v49  ;;  %v807_v40 = vsel %vm766_vm2, %v753_v57, %v806_v62  ;;  %v174_v46 = vunpack.c.l.bf16 %v1708_v12  ;;  %v176_v47 = vunpack.c.l.bf16 %v1710_v42 }
  0xc5   :  { %v587_v52 = vrot.slane %v586_v15, 1  ;;  %v634_v53 = vpack.c.bf16 %v572_v50, %v572_v50  ;;  %v759_v34 = vunpack.c.l.b16 %v632_v4  ;;  %v808_v54 = vsel %vm768_vm3, %v755_v30, %v807_v40 }
  0xc6   :  { %v809_v51 = vsel %vm770_vm4, %v757_v39, %v808_v54  ;;  %v178_v31 = vunpack.c.l.bf16 %v1712_v21  ;;  %v180_v19 = vunpack.c.l.bf16 %v1715_v28  ;;  %v182_v59 = vunpack.c.l.bf16 %v1717_v9 }
  0xc7   :  { %v588_v20 = vadd.f32 %v587_v52, %v586_v15  ;;  %v761_v37 = vunpack.c.l.b16 %v634_v53  ;;  %v810_v23 = vsel %vm772_vm5, %v759_v34, %v809_v51  ;;  %v184_v12 = vunpack.c.l.bf16 %v1721_v55 }
  0xc8   :  { %v186_v42 = vunpack.c.l.bf16 %v1723_v16  ;;  %v188_v24 = vunpack.c.l.bf16 %v1729_v63  ;;  %v190_v11 = vunpack.c.l.bf16 %v1731_v58  ;;  %v192_v36 = vunpack.c.l.bf16 %v1737_v56 }
  0xc9   :  { %v636_v61 = vpack.c.bf16 %v588_v20, %v588_v20  ;;  %v811_v21 = vsel %vm774_vm6, %v761_v37, %v810_v23  ;;  %v194_v28 = vunpack.c.l.bf16 %v1739_v5  ;;  %v196_v9 = vunpack.c.l.bf16 %v1745_v8 }
  0xca   :  { %v198_v10 = vunpack.c.l.bf16 %v1747_v43  ;;  %v200_v35 = vunpack.c.l.bf16 %v1749_v44  ;;  %v202_v55 = vunpack.c.l.bf16 %v1755_v45  ;;  %v461_v16 = vadd.f32 %v174_v46, %v172_v2 }
  0xcb   :  { %v763_v25 = vunpack.c.l.b16 %v636_v61  ;;  %v477_v63 = vadd.f32 %v178_v31, %v176_v47  ;;  %v493_v3 = vadd.f32 %v182_v59, %v180_v19  ;;  %v509_v58 = vadd.f32 %v186_v42, %v184_v12 }
  0xcc   :  { %v462_v0 = vrot.slane %v461_v16, 4  ;;  %v525_v56 = vadd.f32 %v190_v11, %v188_v24  ;;  %v541_v32 = vadd.f32 %v194_v28, %v192_v36  ;;  %v557_v33 = vadd.f32 %v198_v10, %v196_v9 }
  0xcd   :  { %v812_v38 = vsel %vm776_vm7, %v763_v25, %v811_v21  ;;  %v478_v5 = vrot.slane %v477_v63, 4  ;;  %v494_v41 = vrot.slane %v493_v3, 4  ;;  %v510_v8 = vrot.slane %v509_v58, 4 }
  0xce   :  { %v816_v60 = vpack.c.b16 %v812_v38, %v812_v38  ;;  %v463_v43 = vadd.f32 %v462_v0, %v461_v16  ;;  %v526_v22 = vrot.slane %v525_v56, 4  ;;  %v542_v44 = vrot.slane %v541_v32, 4 }
  0xcf   :  { %v479_v29 = vadd.f32 %v478_v5, %v477_v63  ;;  %v495_v45 = vadd.f32 %v494_v41, %v493_v3  ;;  %v511_v1 = vadd.f32 %v510_v8, %v509_v58  ;;  %v558_v48 = vrot.slane %v557_v33, 4 }
  0xd0   :  { %1112 = vmatprep.mubr.msk.bf16.mxu0 %vm211_vm0, %v816_v60  ;;  %v464_v26 = vrot.slane %v463_v43, 2  ;;  %v527_v7 = vadd.f32 %v526_v22, %v525_v56  ;;  %v543_v14 = vadd.f32 %v542_v44, %v541_v32  ;;  %v573_v13 = vadd.f32 %v202_v55, %v200_v35 }
  0xd1   :  { %v480_v17 = vrot.slane %v479_v29, 2  ;;  %v496_v18 = vrot.slane %v495_v45, 2  ;;  %v512_v27 = vrot.slane %v511_v1, 2  ;;  %v559_v6 = vadd.f32 %v558_v48, %v557_v33  ;;  %v1173_v48 = vld [vmem:[#allocation7 + $0x8] sm:$0xff]  }
  0xd2   :  { %v465_v49 = vadd.f32 %v464_v26, %v463_v43  ;;  %v528_v57 = vrot.slane %v527_v7, 2  ;;  %v544_v30 = vrot.slane %v543_v14, 2  ;;  %v574_v2 = vrot.slane %v573_v13, 4  ;;  %v1098_v26 = vld [vmem:[%s1835_s2] ss:$0 sm:$0xff]  ;;  %s1288_s2 = smov [#allocation8]  }
  0xd3   :  { %v481_v50 = vadd.f32 %v480_v17, %v479_v29  ;;  %v497_v15 = vadd.f32 %v496_v18, %v495_v45  ;;  %v513_v4 = vadd.f32 %v512_v27, %v511_v1  ;;  %v560_v62 = vrot.slane %v559_v6, 2  ;;  %v1172_v1 = vld [vmem:[#allocation7] sm:$0xff]   ;;  %s1085_s26 = sshll.u32 %s1288_s2, 4  ;;  %s1086_s26 = int_to_ptr.vmem [resolvable:$true] %s1085_s26 }
  0xd4   :  { %v466_v39 = vrot.slane %v465_v49, 1  ;;  %v529_v40 = vadd.f32 %v528_v57, %v527_v7  ;;  %v545_v46 = vadd.f32 %v544_v30, %v543_v14  ;;  %v575_v47 = vadd.f32 %v574_v2, %v573_v13  ;;  %1131 = vmatprep.subr.bf16.mxu1 %v1172_v1  ;;  %v1174_v57 = vld [vmem:[#allocation7 + $0x10] sm:$0xff]   ;;  %v1175_v30 = vld [vmem:[#allocation7 + $0x18] sm:$0xff]   ;;  %s1252_s29 = scalar_lea.vmem %s1086_s26, 384  ;;  %p1257_p11 = scmp.lt.s32.totalorder %s1086_s26, %s1086_s26 }
  0xd5   :  { %v482_v52 = vrot.slane %v481_v50, 1  ;;  %v498_v53 = vrot.slane %v497_v15, 1  ;;  %v514_v34 = vrot.slane %v513_v4, 1  ;;  %v561_v54 = vadd.f32 %v560_v62, %v559_v6  ;;  %1132 = vmatpush3.bf16.msra.mxu1 %v1172_v1  ;;  %p1253_p10 = scmp.ne.s32.totalorder %s1086_s26, %s1252_s29  ;;  %p1258_p12 = scmp.lt.s32.totalorder %s1252_s29, %s1252_s29 }
  0xd6   :  { %v467_v51 = vadd.f32 %v466_v39, %v465_v49  ;;  %v530_v31 = vrot.slane %v529_v40, 1  ;;  %v546_v19 = vrot.slane %v545_v46, 1  ;;  %v576_v59 = vrot.slane %v575_v47, 2  ;;  %1133 = vmatprep.subr.bf16.mxu1 %v1173_v48 }
  0xd7   :  { %v483_v20 = vadd.f32 %v482_v52, %v481_v50  ;;  %v499_v37 = vadd.f32 %v498_v53, %v497_v15  ;;  %v515_v23 = vadd.f32 %v514_v34, %v513_v4  ;;  %v562_v12 = vrot.slane %v561_v54, 1  ;;  %v1179_v52 = vld [vmem:[#allocation7 + $0x38] sm:$0xff]   ;;  %p1259_p13 = por %p1258_p12, %p1257_p11 }
  0xd8   :  { %v531_v42 = vadd.f32 %v530_v31, %v529_v40  ;;  %v547_v24 = vadd.f32 %v546_v19, %v545_v46  ;;  %v577_v11 = vadd.f32 %v576_v59, %v575_v47  ;;  %v621_v36 = vpack.c.bf16 %v467_v51, %v467_v51  ;;  %v1176_v40 = vld [vmem:[#allocation7 + $0x20] sm:$0xff]   ;;  %v1177_v46 = vld [vmem:[#allocation7 + $0x28] sm:$0xff]   ;;  %v1178_v47 = vld [vmem:[#allocation7 + $0x30] sm:$0xff]  }
  0xd9   :  { %v563_v61 = vadd.f32 %v562_v12, %v561_v54  ;;  %v623_v21 = vpack.c.bf16 %v483_v20, %v483_v20  ;;  %v625_v28 = vpack.c.bf16 %v499_v37, %v499_v37  ;;  %v627_v9 = vpack.c.bf16 %v515_v23, %v515_v23  ;;  %1134 = vmatpush3.bf16.msra.mxu1 %v1173_v48  ;;  %p1260_p0 = pnand %p1259_p13, %p1253_p10 }
  0xda   :  { %v578_v10 = vrot.slane %v577_v11, 1  ;;  %v629_v35 = vpack.c.bf16 %v531_v42, %v531_v42  ;;  %v631_v55 = vpack.c.bf16 %v547_v24, %v547_v24  ;;  %v748_v16 = vunpack.c.l.b16 %v621_v36  ;;  %1135 = vmatprep.subr.bf16.mxu1 %v1174_v57 }
  0xdb   :  { %v633_v25 = vpack.c.bf16 %v563_v61, %v563_v61  ;;  %v750_v63 = vunpack.c.l.b16 %v623_v21  ;;  %v752_v3 = vunpack.c.l.b16 %v625_v28  ;;  %v754_v58 = vunpack.c.l.b16 %v627_v9 }
  0xdc   :  { %v579_v0 = vadd.f32 %v578_v10, %v577_v11  ;;  %v756_v56 = vunpack.c.l.b16 %v629_v35  ;;  %v758_v32 = vunpack.c.l.b16 %v631_v55 }
  0xdd   :  { %v799_v33 = vsel %vm764_vm1, %v750_v63, %v748_v16  ;;  %v760_v5 = vunpack.c.l.b16 %v633_v25  ;;  %1136 = vmatpush3.bf16.msra.mxu1 %v1174_v57 }
  0xde   :  { %v635_v38 = vpack.c.bf16 %v579_v0, %v579_v0  ;;  %v800_v41 = vsel %vm766_vm2, %v752_v3, %v799_v33  ;;  %1137 = vmatprep.subr.bf16.mxu1 %v1175_v30 }
  0xdf   :  { %v801_v8 = vsel %vm768_vm3, %v754_v58, %v800_v41 }
  0xe0   :  { %v762_v60 = vunpack.c.l.b16 %v635_v38  ;;  %v802_v43 = vsel %vm770_vm4, %v756_v56, %v801_v8 }
  0xe1   :  { %v803_v22 = vsel %vm772_vm5, %v758_v32, %v802_v43  ;;  %1138 = vmatpush3.bf16.msra.mxu1 %v1175_v30 }
  0xe2   :  { %v804_v44 = vsel %vm774_vm6, %v760_v5, %v803_v22  ;;  %1139 = vmatprep.subr.bf16.mxu1 %v1176_v40 }
  0xe3   :  { %v805_v29 = vsel %vm776_vm7, %v762_v60, %v804_v44 }
  0xe4   :  { %v815_v45 = vpack.c.b16 %v805_v29, %v805_v29 }
  0xe5   :  { %1140 = vmatpush3.bf16.msra.mxu1 %v1176_v40 }
  0xe6   :  { %938 = vmatmul.mubr.bf16.gmra.mrb[4].mxu0 %v815_v45  ;;  %1141 = vmatprep.subr.bf16.mxu1 %v1177_v46 }
  0xe9   :  { %1142 = vmatpush3.bf16.msra.mxu1 %v1177_v46 }
  0xea   :  { %1143 = vmatprep.subr.bf16.mxu1 %v1178_v47 }
  0xed   :  { %1144 = vmatpush3.bf16.msra.mxu1 %v1178_v47 }
  0xee   :  { %1145 = vmatprep.subr.bf16.mxu1 %v1179_v52 }
  0xf1   :  { %1146 = vmatpush3.bf16.msra.mxu1 %v1179_v52 }
 0x184   :  { %v931_v7 = vpop.f32.mrb[0].mxu0 }
 0x185   :  { %v932_v14 = vadd.f32 %v1098_v26, %v931_v7  ;;  %v933_v13 = vpop.f32.mrb[1].mxu0 }
 0x186   :  { %v934_v17 = vpop.f32.mrb[2].mxu0 }
 0x187   :  { %v935_v18 = vadd.f32 %v1098_v26, %v934_v17  ;;  %v936_v27 = vpop.f32.mrb[3].mxu0  ;;  %v945_v6 = vmul.f32 %v932_v14, %v932_v14 }
 0x189   :  { %948 = vadd.xlane.f32.xlu0 %v945_v6  ;;  %v946_v49 = vmul.f32 %v935_v18, %v935_v18 }
 0x18d   :  { %950 = vadd.xlane.f32.xlu0 %v946_v49 }
 0x1b9   :  { %v939_v2 = vpop.f32.mrb[4].mxu0 }
 0x1ba   :  { %v940_v50 = vadd.f32 %v1098_v26, %v939_v2  ;;  %v941_v15 = vpop.f32.mrb[5].mxu0 }
 0x1bb   :  { %v942_v4 = vpop.f32.mrb[6].mxu0 }
 0x1bc   :  { %v943_v62 = vpop.f32.mrb[7].mxu0  ;;  %v947_v39 = vmul.f32 %v940_v50, %v940_v50 }
 0x1be   :  { %952 = vadd.xlane.f32.xlu1 %v947_v39 }
 0x216   :  { %v949_v53 = vpop.xlane.xlu0 %948 }
 0x217   :  { %v954_v34 = vadd.f32 1e-12, %v949_v53 }
 0x219   :  { %1180 = vrsqrt.f32 %v954_v34 }
 0x21a   :  { %v951_v54 = vpop.xlane.xlu0 %950 }
 0x21b   :  { %v955_v51 = vadd.f32 1e-12, %v951_v54 }
 0x21d   :  { %1182 = vrsqrt.f32 %v955_v51 }
 0x223   :  { %v1181_v31 = vpop.eup %1180 }
 0x224   :  { %v960_v59 = vmul.f32 %v1181_v31, %v932_v14 }
 0x227   :  { %v1183_v19 = vpop.eup %1182 }
 0x228   :  { %v961_v20 = vmul.f32 %v1183_v19, %v935_v18 }
 0x22a   :  { %v963_v37 = vpack.c.bf16 %v961_v20, %v960_v59 }
 0x22c   :  { %1147 = vmatprep.mubr.bf16.mxu1 %v963_v37 }
 0x24b   :  { %v953_v23 = vpop.xlane.xlu1 %952 }
 0x24c   :  { %v956_v12 = vadd.f32 1e-12, %v953_v23 }
 0x24e   :  { %1184 = vrsqrt.f32 %v956_v12 }
 0x258   :  { %v1185_v42 = vpop.eup %1184 }
 0x259   :  { %v962_v24 = vmul.f32 %v1185_v42, %v940_v50 }
 0x25b   :  { %v964_v11 = vpack.c.bf16 %v962_v24, %v962_v24 }
 0x25d   :  { %1148 = vmatmul.mubr.bf16.vlgmr.msra.gmra.mrb[0].mxu1 %v964_v11 }
 0x330   :  { %v1149_v36 = vpop.f32.mrb[0].mxu1 }
 0x331   :  { %1079 = vst [vmem:[#allocation8 + $0x10] sm:$0xff] %v1149_v36  ;;  %v1063_v61 = vpop.f32.mrb[1].mxu1 }
 0x332   :  { %1077 = vst [vmem:[#allocation8] sm:$0xff] %v1063_v61  ;;  %v1150_v21 = vpop.f32.mrb[2].mxu1 }
 0x333   :  { %v1066_v28 = vpop.f32.mrb[3].mxu1 }
 0x334   :  { %1078 = vst [vmem:[#allocation8 + $0x8] sm:$0xff] %v1066_v28 }
 0x335   :  { %1263 = shalt.err (!%p1260_p0)
}
 0x336   :  { %s1264_s6 = scalar_lea.hbm %s1837_s4, 384 }
 0x337   :  { %p1265_p1 = scmp.ne.s32.totalorder %s1837_s4, %s1264_s6  ;;  %p1268_p2 = scmp.lt.u32.totalorder %s1264_s6, %s1837_s4 }
 0x339   :  { %p1270_p3 = pnand %p1268_p2, %p1265_p1 }
 0x33b   :  { %1273 = shalt.err (!%p1270_p3)
}
 0x33c   :  { %1091 = dma.vmem_to_hbm [thread:$0]  %s1086_s26, 384, %s1837_s4, [#allocation4], %s1284_s1, %s1284_s1, %s1285_s13  }
 0x33d   :  { %1278 = dma.done.wait [#allocation4], 384  }
 0x33e   :  { %1279 = vsyncadd [#allocation4], 4294966912 }
 0x33f   :  { %1095 = vsyncpa [#allocation3], 1 }
 0x340   :  { %1096 = vsyncpa [#allocation6], 1 }
 0x341   :  { %1097 = vsyncpa [#allocation4], 1 }

</bundles_post_ra>
